<compile_context>
chip_gen: v7x
topology: tpu7x:2x2x1
jax: 0.10.0
libtpu: 0.0.40
codegen_flags: <defaults>
</compile_context>

<pallas_src>
import functools
import math

import jax
import jax.numpy as jnp
from jax.experimental import pallas as pl
from jax.experimental.pallas import tpu as pltpu


def _sigmoid(x):
    # divide moved to the EUP slot via approximate reciprocal (perf feedback)
    return pl.reciprocal(1.0 + jnp.exp(-x), approx=True)


# ----------------------------------------------------------------------------
# Fused Residual_group kernel.  grid = (batch_tiles, layer)
# ----------------------------------------------------------------------------
def residual_group_kernel(
        x_ref,        # VMEM (BT, L, C)        noise tile, channels-last, f32
        pt_ref,       # VMEM (BT, 1, C)        precomputed fc_t output for (layer, tile)
        wc_ref,       # VMEM (3, C, 2C)  bf16  conv k=3 weight, one slab per tap
        wrs_ref,      # VMEM (C, C+S)    bf16  fused res|skip 1x1 conv weight
        sp_ref,       # VMEM (1, 7C+S)   f32   packed [conv bias | ln_g | ln_b | res|skip bias]
        skip_ref,     # OUT  (BT, L, S)  f32   resident skip accumulator
        h_scr,        # VMEM (BT, L, C)  f32   carried activation
        *, num_layers):
    n = pl.program_id(1)
    BT, L, C = h_scr.shape
    S = skip_ref.shape[-1]
    M = BT * L

    # ---- first layer of each batch tile: init carries ----
    @pl.when(n == 0)
    def _init():
        h_scr[...] = x_ref[...]
        skip_ref[...] = jnp.zeros_like(skip_ref)

    x = h_scr[...]                                                    # (BT, L, C) f32
    sp = sp_ref[...]                                                  # (1, 7C+S)
    bc = sp[:, 0:2 * C]
    ln_g = sp[:, 2 * C:4 * C]
    ln_b = sp[:, 4 * C:6 * C]
    brs = sp[:, 6 * C:]

    # ---- h = x + fc_t(diffusion_step_embed), broadcast along L ----
    h = x + pt_ref[...]                                               # (BT,L,C)+(BT,1,C)
    hb = h.astype(jnp.bfloat16)                                       # cast once

    # ---- Conv1d(C -> 2C, k=3, pad=1): three K=C matmuls, f32 accumulate ----
    zero = jnp.zeros((BT, 1, C), jnp.bfloat16)
    h_prev = jnp.concatenate([zero, hb[:, :-1, :]], axis=1)           # h[l-1]
    h_next = jnp.concatenate([hb[:, 1:, :], zero], axis=1)            # h[l+1]

    y = jnp.dot(h_prev.reshape(M, C), wc_ref[0],
                preferred_element_type=jnp.float32)
    y = y + jnp.dot(hb.reshape(M, C), wc_ref[1],
                    preferred_element_type=jnp.float32)
    y = y + jnp.dot(h_next.reshape(M, C), wc_ref[2],
                    preferred_element_type=jnp.float32)
    y = y + bc                                                        # (M, 2C) f32

    # TODO(synk): the S4 SSM core (HiPPO A, Cauchy kernel, FFT long convolution)
    # has no clean Pallas equivalent; only the S4Layer wrapper LayerNorm over the
    # feature axis is applied here.
    mu = jnp.mean(y, axis=-1, keepdims=True)
    ms = jnp.mean(y * y, axis=-1, keepdims=True)
    y = (y - mu) * jax.lax.rsqrt(ms - mu * mu + 1e-5)
    y = y * ln_g + ln_b

    # ---- gated activation (f32 elementwise) ----
    out = jnp.tanh(y[:, :C]) * _sigmoid(y[:, C:])                     # (M, C)

    # ---- fused res(1x1) | skip(1x1) conv: one MXU pass over `out` ----
    rs = jnp.dot(out.astype(jnp.bfloat16), wrs_ref[...],
                 preferred_element_type=jnp.float32) + brs            # (M, C+S)

    x2 = x.reshape(M, C)
    h_scr[...] = ((x2 + rs[:, :C]) * jnp.float32(math.sqrt(0.5))).reshape(BT, L, C)
    skip_ref[...] += rs[:, C:].reshape(BT, L, S)

    @pl.when(n == num_layers - 1)
    def _finalize():
        skip_ref[...] *= jnp.float32(math.sqrt(1.0 / num_layers))


# ----------------------------------------------------------------------------
# Parameter construction (deterministic; shapes follow the PyTorch __init__).
# Linear weights/biases and conv biases ~ U(+-1/sqrt(fan_in)); conv weights
# kaiming_normal_; weight_norm is the identity at init.
# ----------------------------------------------------------------------------
def init_params(key, *, res_channels, skip_channels, num_res_layers,
                diffusion_step_embed_dim_in, diffusion_step_embed_dim_mid,
                diffusion_step_embed_dim_out):
    C, S, N = res_channels, skip_channels, num_res_layers
    E_in, E_mid, E_out = (diffusion_step_embed_dim_in,
                          diffusion_step_embed_dim_mid,
                          diffusion_step_embed_dim_out)
    ks = list(jax.random.split(key, 12))

    def uni(k, shape, fan_in):
        bound = 1.0 / math.sqrt(fan_in)
        return jax.random.uniform(k, shape, jnp.float32, -bound, bound)

    def kaiming(k, shape, fan_in):
        return math.sqrt(2.0 / fan_in) * jax.random.normal(k, shape, jnp.float32)

    # fc_t1 / fc_t2 (stored pre-transposed: (in, out)); consumed in the wrapper
    w1 = uni(ks[0], (E_in, E_mid), E_in)
    b1 = uni(ks[1], (E_mid,), E_in)
    w2 = uni(ks[2], (E_mid, E_out), E_mid)
    b2 = uni(ks[3], (E_out,), E_mid)

    # per-layer fc_t (consumed in the wrapper: part_t is precomputed)
    wt = uni(ks[4], (N, E_out, C), E_out)
    bt = uni(ks[5], (N, 1, C), E_out)

    # Conv1d(C, 2C, 3): weight (out, in, k) -> per-tap slabs (N, 3, in, out)
    conv_w = kaiming(ks[6], (N, 2 * C, C, 3), C * 3)
    wc = jnp.transpose(conv_w, (0, 3, 2, 1))                          # (N, 3, C, 2C)
    bc = uni(ks[7], (N, 1, 2 * C), C * 3)

    ln_g = jnp.ones((N, 1, 2 * C), jnp.float32)
    ln_b = jnp.zeros((N, 1, 2 * C), jnp.float32)

    # res / skip 1x1 convs, fused along the output dim: (in, C+S)
    res_w = jnp.transpose(kaiming(ks[8], (N, C, C), C), (0, 2, 1))
    skp_w = jnp.transpose(kaiming(ks[10], (N, S, C), C), (0, 2, 1))
    wrs = jnp.concatenate([res_w, skp_w], axis=2)                     # (N, C, C+S)
    brs = jnp.concatenate([uni(ks[9], (N, 1, C), C),
                           uni(ks[11], (N, 1, S), C)], axis=2)        # (N, 1, C+S)

    # pack small per-layer vectors into one slab (single DMA per step)
    small = jnp.concatenate([bc, ln_g, ln_b, brs], axis=2)            # (N, 1, 7C+S)

    return {"w1": w1, "b1": b1, "w2": w2, "b2": b2, "wt": wt, "bt": bt,
            "wc": wc.astype(jnp.bfloat16),
            "wrs": wrs.astype(jnp.bfloat16),
            "small": small}


# ----------------------------------------------------------------------------
# fc_t path hoisted out of the kernel (runs once per call, overlapped by XLA)
# ----------------------------------------------------------------------------
def compute_part_t(diffusion_steps, params, *, d_in):
    half = d_in // 2
    steps = diffusion_steps.astype(jnp.float32).reshape(-1, 1)        # (B, 1)
    freq = jnp.exp(-jnp.arange(half, dtype=jnp.float32)
                   * (math.log(10000.0) / (half - 1)))                # (half,)
    arg = steps * freq[None, :]                                       # (B, half)
    embed = jnp.concatenate([jnp.sin(arg), jnp.cos(arg)], axis=-1)    # (B, d_in)
    e = embed @ params["w1"] + params["b1"]
    e = e * jax.nn.sigmoid(e)                                         # swish(fc_t1)
    e = e @ params["w2"] + params["b2"]
    e = e * jax.nn.sigmoid(e)                                         # swish(fc_t2)
    pt = jnp.einsum("be,nec->nbc", e, params["wt"]) + params["bt"]    # (N, B, C)
    return pt[:, :, None, :]                                          # (N, B, 1, C)


def _pick_batch_tile(B, cap=8):
    for t in range(min(B, cap), 0, -1):
        if B % t == 0:
            return t
    return 1


# ----------------------------------------------------------------------------
# Forward wrapper: one fused pallas_call for the whole residual group.
# ----------------------------------------------------------------------------
def residual_group_forward(noise, conditional, diffusion_steps, params, *,
                           diffusion_step_embed_dim_in, num_res_layers):
    # `conditional` is unused: the reference Residual_block.forward never applies
    # cond_conv / S42 to it.
    del conditional
    B, C, L = noise.shape
    N = num_res_layers
    S = params["wrs"].shape[-1] - C

    part_t = compute_part_t(diffusion_steps, params,
                            d_in=diffusion_step_embed_dim_in)          # (N, B, 1, C)

    # One-time boundary relayout NCL -> channels-last (lane-dense at realistic C)
    x_lc = jnp.transpose(noise, (0, 2, 1)).astype(jnp.float32)         # (B, L, C)

    BT = _pick_batch_tile(B)
    n_bt = B // BT

    layer_par = lambda b, n: (n, 0, 0)

    grid_spec = pltpu.PrefetchScalarGridSpec(
        num_scalar_prefetch=0,
        grid=(n_bt, N),
        in_specs=[
            pl.BlockSpec((BT, L, C), lambda b, n: (b, 0, 0)),               # x tile
            pl.BlockSpec((None, BT, 1, C), lambda b, n: (n, b, 0, 0)),       # part_t
            pl.BlockSpec((None, 3, C, 2 * C), lambda b, n: (n, 0, 0, 0)),    # wc (bf16)
            pl.BlockSpec((None, C, C + S), layer_par),                       # wrs (bf16)
            pl.BlockSpec((None, 1, 7 * C + S), layer_par),                   # packed small
        ],
        out_specs=pl.BlockSpec((BT, L, S), lambda b, n: (b, 0, 0)),          # skip acc
        scratch_shapes=[pltpu.VMEM((BT, L, C), jnp.float32)],                # carried h
    )

    skip = pl.pallas_call(
        functools.partial(residual_group_kernel, num_layers=N),
        out_shape=jax.ShapeDtypeStruct((B, L, S), jnp.float32),
        grid_spec=grid_spec,
        compiler_params=pltpu.CompilerParams(
            dimension_semantics=("parallel", "arbitrary"),
            # safe across v5e/v6e (128 MiB physical) and v7x (64 MiB physical);
            # re-derive together with BT / L tiling for a specific generation.
            vmem_limit_bytes=48 * 1024 * 1024),
    )(x_lc, part_t, params["wc"], params["wrs"], params["small"])

    return jnp.transpose(skip, (0, 2, 1))   # back to (B, skip_channels, L)


# ----------------------------------------------------------------------------
# Pure-JAX reference (same math / dtypes as the kernel) for a parity check.
# ----------------------------------------------------------------------------
def reference_forward(noise, diffusion_steps, params, *, d_in, num_res_layers):
    B, C, L = noise.shape
    N = num_res_layers
    S = params["wrs"].shape[-1] - C
    part_t = compute_part_t(diffusion_steps, params, d_in=d_in)       # (N, B, 1, C)
    sm = params["small"]
    bc, ln_g, ln_b, brs = (sm[:, :, :2 * C], sm[:, :, 2 * C:4 * C],
                           sm[:, :, 4 * C:6 * C], sm[:, :, 6 * C:])
    x = jnp.transpose(noise, (0, 2, 1)).astype(jnp.float32)
    h = x
    skip = jnp.zeros((B, L, S), jnp.float32)
    for n in range(N):
        hh = h + part_t[n]
        hb = hh.astype(jnp.bfloat16)
        zero = jnp.zeros((B, 1, C), jnp.bfloat16)
        h_prev = jnp.concatenate([zero, hb[:, :-1]], axis=1)
        h_next = jnp.concatenate([hb[:, 1:], zero], axis=1)
        wc = params["wc"][n]
        y = (jnp.einsum("blc,cd->bld", h_prev, wc[0], preferred_element_type=jnp.float32)
             + jnp.einsum("blc,cd->bld", hb, wc[1], preferred_element_type=jnp.float32)
             + jnp.einsum("blc,cd->bld", h_next, wc[2], preferred_element_type=jnp.float32)
             + bc[n])
        mu = jnp.mean(y, axis=-1, keepdims=True)
        var = jnp.mean(jnp.square(y - mu), axis=-1, keepdims=True)
        y = (y - mu) * jax.lax.rsqrt(var + 1e-5) * ln_g[n] + ln_b[n]
        out = jnp.tanh(y[..., :C]) * jax.nn.sigmoid(y[..., C:])
        rs = jnp.einsum("blc,cd->bld", out.astype(jnp.bfloat16), params["wrs"][n],
                        preferred_element_type=jnp.float32) + brs[n]
        h = (h + rs[..., :C]) * math.sqrt(0.5)
        skip = skip + rs[..., C:]
    skip = skip * math.sqrt(1.0 / N)
    return jnp.transpose(skip, (0, 2, 1))


if __name__ == "__main__":
    key = jax.random.PRNGKey(0)
    k_noise, k_cond, k_steps, k_params = jax.random.split(key, 4)

    B, L = 2, 16
    res_channels, skip_channels, in_channels = 8, 8, 4
    num_res_layers = 3
    d_in, d_mid, d_out = 16, 32, 32

    noise = jax.random.normal(k_noise, (B, res_channels, L), dtype=jnp.float32)
    conditional = jax.random.normal(k_cond, (B, 2 * in_channels, L), dtype=jnp.float32)
    diffusion_steps = jax.random.randint(k_steps, (B, 1), 0, 200).astype(jnp.float32)

    params = init_params(
        k_params,
        res_channels=res_channels, skip_channels=skip_channels,
        num_res_layers=num_res_layers,
        diffusion_step_embed_dim_in=d_in,
        diffusion_step_embed_dim_mid=d_mid,
        diffusion_step_embed_dim_out=d_out)

    out = residual_group_forward(
        noise, conditional, diffusion_steps, params,
        diffusion_step_embed_dim_in=d_in, num_res_layers=num_res_layers)
    jax.block_until_ready(out)

    assert out.shape == (B, skip_channels, L)
    assert bool(jnp.all(jnp.isfinite(out)))

    ref = reference_forward(noise, diffusion_steps, params,
                            d_in=d_in, num_res_layers=num_res_layers)
    jax.block_until_ready(ref)
    assert bool(jnp.allclose(out, ref, atol=5e-2, rtol=5e-2)), \
        f"max abs err {float(jnp.max(jnp.abs(out - ref)))}"

    print("KERNEL_OK")
</pallas_src>

<mosaic_0001>
module attributes {stable_mosaic.version = 11 : i64} {
  func.func @residual_group_kernel(%arg0: i32, %arg1: i32, %arg2: memref<2x16x8xf32, #tpu.memory_space<vmem>>, %arg3: memref<1x2x1x8xf32, #tpu.memory_space<vmem>>, %arg4: memref<1x3x8x16xbf16, #tpu.memory_space<vmem>>, %arg5: memref<1x8x16xbf16, #tpu.memory_space<vmem>>, %arg6: memref<1x1x64xf32, #tpu.memory_space<vmem>>, %arg7: memref<2x16x8xf32, #tpu.memory_space<vmem>>, %arg8: memref<2x16x8xf32, #tpu.memory_space<vmem>>) attributes {dimension_semantics = [#tpu.dimension_semantics<parallel>, #tpu.dimension_semantics<arbitrary>], iteration_bounds = array<i64: 1, 3>, scalar_prefetch = 0 : i64, scratch_operands = 1 : i64, tpu.core_type = #tpu.core_type<tc>, window_params = [{transform_indices = @transform_0, window_bounds = array<i64: 2, 16, 8>}, {transform_indices = @transform_1, window_bounds = array<i64: 1, 2, 1, 8>}, {transform_indices = @transform_2, window_bounds = array<i64: 1, 3, 8, 16>}, {transform_indices = @transform_3, window_bounds = array<i64: 1, 8, 16>}, {transform_indices = @transform_4, window_bounds = array<i64: 1, 1, 64>}, {transform_indices = @transform_5, window_bounds = array<i64: 2, 16, 8>}]} {
    %c0_i32 = arith.constant 0 : i32
    %0 = arith.cmpi eq, %arg1, %c0_i32 : i32
    %1 = arith.extui %0 : i1 to i32
    %c0_i32_0 = arith.constant 0 : i32
    %2 = arith.cmpi ne, %1, %c0_i32_0 : i32
    scf.if %2 {
      %c0_45 = arith.constant 0 : index
      %c0_46 = arith.constant 0 : index
      %c0_47 = arith.constant 0 : index
      %89 = vector.load %arg2[%c0_45, %c0_46, %c0_47] : memref<2x16x8xf32, #tpu.memory_space<vmem>>, vector<2x16x8xf32>
      %c0_48 = arith.constant 0 : index
      %c0_49 = arith.constant 0 : index
      %c0_50 = arith.constant 0 : index
      %90 = vector.load %arg8[%c0_48, %c0_49, %c0_50] : memref<2x16x8xf32, #tpu.memory_space<vmem>>, vector<2x16x8xf32>
      tpu.vector_store %arg8[%c0_48, %c0_49, %c0_50], %89 {strides = array<i32>} : memref<2x16x8xf32, #tpu.memory_space<vmem>>, vector<2x16x8xf32>,
      %cst_51 = arith.constant 0.000000e+00 : f32
      %91 = vector.broadcast %cst_51 : f32 to vector<2x16x8xf32>
      %c0_52 = arith.constant 0 : index
      %c0_53 = arith.constant 0 : index
      %c0_54 = arith.constant 0 : index
      %92 = vector.load %arg7[%c0_52, %c0_53, %c0_54] : memref<2x16x8xf32, #tpu.memory_space<vmem>>, vector<2x16x8xf32>
      tpu.vector_store %arg7[%c0_52, %c0_53, %c0_54], %91 {strides = array<i32>} : memref<2x16x8xf32, #tpu.memory_space<vmem>>, vector<2x16x8xf32>,
    } else {
    }
    %c0 = arith.constant 0 : index
    %c0_1 = arith.constant 0 : index
    %c0_2 = arith.constant 0 : index
    %3 = vector.load %arg8[%c0, %c0_1, %c0_2] : memref<2x16x8xf32, #tpu.memory_space<vmem>>, vector<2x16x8xf32>
    %c0_3 = arith.constant 0 : index
    %c0_4 = arith.constant 0 : index
    %c0_5 = arith.constant 0 : index
    %4 = vector.load %arg6[%c0_3, %c0_4, %c0_5] : memref<1x1x64xf32, #tpu.memory_space<vmem>>, vector<1x1x64xf32>
    %5 = vector.shape_cast %4 : vector<1x1x64xf32> to vector<1x64xf32>
    %6 = vector.extract_strided_slice %5 {offsets = [0, 0], sizes = [1, 16], strides = [1, 1]} : vector<1x64xf32> to vector<1x16xf32>
    %7 = vector.extract_strided_slice %5 {offsets = [0, 16], sizes = [1, 16], strides = [1, 1]} : vector<1x64xf32> to vector<1x16xf32>
    %8 = vector.extract_strided_slice %5 {offsets = [0, 32], sizes = [1, 16], strides = [1, 1]} : vector<1x64xf32> to vector<1x16xf32>
    %9 = vector.extract_strided_slice %5 {offsets = [0, 48], sizes = [1, 16], strides = [1, 1]} : vector<1x64xf32> to vector<1x16xf32>
    %c0_6 = arith.constant 0 : index
    %c0_7 = arith.constant 0 : index
    %c0_8 = arith.constant 0 : index
    %c0_9 = arith.constant 0 : index
    %10 = vector.load %arg3[%c0_6, %c0_7, %c0_8, %c0_9] : memref<1x2x1x8xf32, #tpu.memory_space<vmem>>, vector<1x2x1x8xf32>
    %11 = vector.shape_cast %10 : vector<1x2x1x8xf32> to vector<2x1x8xf32>
    %12 = vector.broadcast %11 : vector<2x1x8xf32> to vector<2x16x8xf32>
    %13 = arith.addf %3, %12 : vector<2x16x8xf32>
    %14 = arith.truncf %13 : vector<2x16x8xf32> to vector<2x16x8xbf16>
    %cst = arith.constant 0.000000e+00 : bf16
    %15 = vector.broadcast %cst : bf16 to vector<2x1x8xbf16>
    %16 = vector.extract_strided_slice %14 {offsets = [0, 0, 0], sizes = [2, 15, 8], strides = [1, 1, 1]} : vector<2x16x8xbf16> to vector<2x15x8xbf16>
    %17 = tpu.concatenate %15, %16 in 1 : vector<2x1x8xbf16>, vector<2x15x8xbf16> -> vector<2x16x8xbf16>
    %18 = vector.extract_strided_slice %14 {offsets = [0, 1, 0], sizes = [2, 15, 8], strides = [1, 1, 1]} : vector<2x16x8xbf16> to vector<2x15x8xbf16>
    %19 = tpu.concatenate %18, %15 in 1 : vector<2x15x8xbf16>, vector<2x1x8xbf16> -> vector<2x16x8xbf16>
    %20 = vector.shape_cast %17 : vector<2x16x8xbf16> to vector<32x8xbf16>
    %c0_10 = arith.constant 0 : index
    %c0_11 = arith.constant 0 : index
    %c0_12 = arith.constant 0 : index
    %c0_13 = arith.constant 0 : index
    %21 = vector.load %arg4[%c0_10, %c0_11, %c0_12, %c0_13] : memref<1x3x8x16xbf16, #tpu.memory_space<vmem>>, vector<1x1x8x16xbf16>
    %22 = vector.shape_cast %21 : vector<1x1x8x16xbf16> to vector<8x16xbf16>
    %cst_14 = arith.constant dense<0.000000e+00> : vector<32x16xf32>
    %23 = tpu.matmul %20, %22, %cst_14 {dimension_numbers = #tpu.dot_dimension_numbers<[1], [0], [0], [1], [0, 0, 1, 1], [], []>} : vector<32x8xbf16>, vector<8x16xbf16>, vector<32x16xf32> -> vector<32x16xf32>
    %24 = vector.shape_cast %14 : vector<2x16x8xbf16> to vector<32x8xbf16>
    %c0_15 = arith.constant 0 : index
    %c1 = arith.constant 1 : index
    %c0_16 = arith.constant 0 : index
    %c0_17 = arith.constant 0 : index
    %25 = vector.load %arg4[%c0_15, %c1, %c0_16, %c0_17] : memref<1x3x8x16xbf16, #tpu.memory_space<vmem>>, vector<1x1x8x16xbf16>
    %26 = vector.shape_cast %25 : vector<1x1x8x16xbf16> to vector<8x16xbf16>
    %cst_18 = arith.constant dense<0.000000e+00> : vector<32x16xf32>
    %27 = tpu.matmul %24, %26, %cst_18 {dimension_numbers = #tpu.dot_dimension_numbers<[1], [0], [0], [1], [0, 0, 1, 1], [], []>} : vector<32x8xbf16>, vector<8x16xbf16>, vector<32x16xf32> -> vector<32x16xf32>
    %28 = arith.addf %23, %27 : vector<32x16xf32>
    %29 = vector.shape_cast %19 : vector<2x16x8xbf16> to vector<32x8xbf16>
    %c0_19 = arith.constant 0 : index
    %c2 = arith.constant 2 : index
    %c0_20 = arith.constant 0 : index
    %c0_21 = arith.constant 0 : index
    %30 = vector.load %arg4[%c0_19, %c2, %c0_20, %c0_21] : memref<1x3x8x16xbf16, #tpu.memory_space<vmem>>, vector<1x1x8x16xbf16>
    %31 = vector.shape_cast %30 : vector<1x1x8x16xbf16> to vector<8x16xbf16>
    %cst_22 = arith.constant dense<0.000000e+00> : vector<32x16xf32>
    %32 = tpu.matmul %29, %31, %cst_22 {dimension_numbers = #tpu.dot_dimension_numbers<[1], [0], [0], [1], [0, 0, 1, 1], [], []>} : vector<32x8xbf16>, vector<8x16xbf16>, vector<32x16xf32> -> vector<32x16xf32>
    %33 = arith.addf %28, %32 : vector<32x16xf32>
    %34 = vector.broadcast %6 : vector<1x16xf32> to vector<32x16xf32>
    %35 = arith.addf %33, %34 : vector<32x16xf32>
    %cst_23 = arith.constant dense<0.000000e+00> : vector<32xf32>
    %36 = vector.multi_reduction <add>, %35, %cst_23 [1] : vector<32x16xf32> to vector<32xf32>
    %37 = vector.shape_cast %36 : vector<32xf32> to vector<32x1xf32>
    %cst_24 = arith.constant 1.600000e+01 : f32
    %38 = vector.broadcast %cst_24 : f32 to vector<32x1xf32>
    %39 = arith.divf %37, %38 : vector<32x1xf32>
    %40 = arith.mulf %35, %35 : vector<32x16xf32>
    %cst_25 = arith.constant dense<0.000000e+00> : vector<32xf32>
    %41 = vector.multi_reduction <add>, %40, %cst_25 [1] : vector<32x16xf32> to vector<32xf32>
    %42 = vector.shape_cast %41 : vector<32xf32> to vector<32x1xf32>
    %cst_26 = arith.constant 1.600000e+01 : f32
    %43 = vector.broadcast %cst_26 : f32 to vector<32x1xf32>
    %44 = arith.divf %42, %43 : vector<32x1xf32>
    %45 = vector.broadcast %39 : vector<32x1xf32> to vector<32x16xf32>
    %46 = arith.subf %35, %45 : vector<32x16xf32>
    %47 = arith.mulf %39, %39 : vector<32x1xf32>
    %48 = arith.subf %44, %47 : vector<32x1xf32>
    %cst_27 = arith.constant 9.99999974E-6 : f32
    %49 = vector.broadcast %cst_27 : f32 to vector<32x1xf32>
    %50 = arith.addf %48, %49 : vector<32x1xf32>
    %51 = math.rsqrt %50 : vector<32x1xf32>
    %52 = vector.broadcast %51 : vector<32x1xf32> to vector<32x16xf32>
    %53 = arith.mulf %46, %52 : vector<32x16xf32>
    %54 = vector.broadcast %7 : vector<1x16xf32> to vector<32x16xf32>
    %55 = arith.mulf %53, %54 : vector<32x16xf32>
    %56 = vector.broadcast %8 : vector<1x16xf32> to vector<32x16xf32>
    %57 = arith.addf %55, %56 : vector<32x16xf32>
    %58 = vector.extract_strided_slice %57 {offsets = [0, 0], sizes = [32, 8], strides = [1, 1]} : vector<32x16xf32> to vector<32x8xf32>
    %59 = math.tanh %58 : vector<32x8xf32>
    %60 = vector.extract_strided_slice %57 {offsets = [0, 8], sizes = [32, 8], strides = [1, 1]} : vector<32x16xf32> to vector<32x8xf32>
    %cst_28 = arith.constant 0.000000e+00 : f32
    %61 = vector.broadcast %cst_28 : f32 to vector<32x8xf32>
    %62 = arith.subf %61, %60 : vector<32x8xf32>
    %63 = math.exp %62 : vector<32x8xf32>
    %cst_29 = arith.constant 1.000000e+00 : f32
    %64 = vector.broadcast %cst_29 : f32 to vector<32x8xf32>
    %65 = arith.addf %64, %63 : vector<32x8xf32>
    %66 = tpu.reciprocal %65 {approx = true} : vector<32x8xf32> -> vector<32x8xf32>
    %67 = arith.mulf %59, %66 : vector<32x8xf32>
    %68 = arith.truncf %67 : vector<32x8xf32> to vector<32x8xbf16>
    %c0_30 = arith.constant 0 : index
    %c0_31 = arith.constant 0 : index
    %c0_32 = arith.constant 0 : index
    %69 = vector.load %arg5[%c0_30, %c0_31, %c0_32] : memref<1x8x16xbf16, #tpu.memory_space<vmem>>, vector<1x8x16xbf16>
    %70 = vector.shape_cast %69 : vector<1x8x16xbf16> to vector<8x16xbf16>
    %cst_33 = arith.constant dense<0.000000e+00> : vector<32x16xf32>
    %71 = tpu.matmul %68, %70, %cst_33 {dimension_numbers = #tpu.dot_dimension_numbers<[1], [0], [0], [1], [0, 0, 1, 1], [], []>} : vector<32x8xbf16>, vector<8x16xbf16>, vector<32x16xf32> -> vector<32x16xf32>
    %72 = vector.broadcast %9 : vector<1x16xf32> to vector<32x16xf32>
    %73 = arith.addf %71, %72 : vector<32x16xf32>
    %74 = vector.shape_cast %3 : vector<2x16x8xf32> to vector<32x8xf32>
    %75 = vector.extract_strided_slice %73 {offsets = [0, 0], sizes = [32, 8], strides = [1, 1]} : vector<32x16xf32> to vector<32x8xf32>
    %76 = arith.addf %74, %75 : vector<32x8xf32>
    %cst_34 = arith.constant 0.707106769 : f32
    %77 = vector.broadcast %cst_34 : f32 to vector<32x8xf32>
    %78 = arith.mulf %76, %77 : vector<32x8xf32>
    %79 = vector.shape_cast %78 : vector<32x8xf32> to vector<2x16x8xf32>
    %c0_35 = arith.constant 0 : index
    %c0_36 = arith.constant 0 : index
    %c0_37 = arith.constant 0 : index
    %80 = vector.load %arg8[%c0_35, %c0_36, %c0_37] : memref<2x16x8xf32, #tpu.memory_space<vmem>>, vector<2x16x8xf32>
    tpu.vector_store %arg8[%c0_35, %c0_36, %c0_37], %79 {strides = array<i32>} : memref<2x16x8xf32, #tpu.memory_space<vmem>>, vector<2x16x8xf32>,
    %c0_38 = arith.constant 0 : index
    %c0_39 = arith.constant 0 : index
    %c0_40 = arith.constant 0 : index
    %81 = vector.load %arg7[%c0_38, %c0_39, %c0_40] : memref<2x16x8xf32, #tpu.memory_space<vmem>>, vector<2x16x8xf32>
    %82 = vector.extract_strided_slice %73 {offsets = [0, 8], sizes = [32, 8], strides = [1, 1]} : vector<32x16xf32> to vector<32x8xf32>
    %83 = vector.shape_cast %82 : vector<32x8xf32> to vector<2x16x8xf32>
    %84 = arith.addf %81, %83 : vector<2x16x8xf32>
    %c0_41 = arith.constant 0 : index
    %c0_42 = arith.constant 0 : index
    %c0_43 = arith.constant 0 : index
    %85 = vector.load %arg7[%c0_41, %c0_42, %c0_43] : memref<2x16x8xf32, #tpu.memory_space<vmem>>, vector<2x16x8xf32>
    tpu.vector_store %arg7[%c0_41, %c0_42, %c0_43], %84 {strides = array<i32>} : memref<2x16x8xf32, #tpu.memory_space<vmem>>, vector<2x16x8xf32>,
    %c2_i32 = arith.constant 2 : i32
    %86 = arith.cmpi eq, %arg1, %c2_i32 : i32
    %87 = arith.extui %86 : i1 to i32
    %c0_i32_44 = arith.constant 0 : i32
    %88 = arith.cmpi ne, %87, %c0_i32_44 : i32
    scf.if %88 {
      %c0_45 = arith.constant 0 : index
      %c0_46 = arith.constant 0 : index
      %c0_47 = arith.constant 0 : index
      %89 = vector.load %arg7[%c0_45, %c0_46, %c0_47] : memref<2x16x8xf32, #tpu.memory_space<vmem>>, vector<2x16x8xf32>
      %cst_48 = arith.constant 0.577350259 : f32
      %90 = vector.broadcast %cst_48 : f32 to vector<2x16x8xf32>
      %91 = arith.mulf %89, %90 : vector<2x16x8xf32>
      %c0_49 = arith.constant 0 : index
      %c0_50 = arith.constant 0 : index
      %c0_51 = arith.constant 0 : index
      %92 = vector.load %arg7[%c0_49, %c0_50, %c0_51] : memref<2x16x8xf32, #tpu.memory_space<vmem>>, vector<2x16x8xf32>
      tpu.vector_store %arg7[%c0_49, %c0_50, %c0_51], %91 {strides = array<i32>} : memref<2x16x8xf32, #tpu.memory_space<vmem>>, vector<2x16x8xf32>,
    } else {
    }
    return
  }
  func.func @transform_0(%arg0: i32, %arg1: i32) -> (i32, i32, i32) {
    %c0_i32 = arith.constant 0 : i32
    %c0_i32_0 = arith.constant 0 : i32
    %c0_i32_1 = arith.constant 0 : i32
    return %arg0, %c0_i32, %c0_i32_0 : i32, i32, i32
  }
  func.func @transform_1(%arg0: i32, %arg1: i32) -> (i32, i32, i32, i32) {
    %c0_i32 = arith.constant 0 : i32
    %c0_i32_0 = arith.constant 0 : i32
    %c0_i32_1 = arith.constant 0 : i32
    return %arg1, %arg0, %c0_i32, %c0_i32_0 : i32, i32, i32, i32
  }
  func.func @transform_2(%arg0: i32, %arg1: i32) -> (i32, i32, i32, i32) {
    %c0_i32 = arith.constant 0 : i32
    %c0_i32_0 = arith.constant 0 : i32
    %c0_i32_1 = arith.constant 0 : i32
    %c0_i32_2 = arith.constant 0 : i32
    return %arg1, %c0_i32, %c0_i32_0, %c0_i32_1 : i32, i32, i32, i32
  }
  func.func @transform_3(%arg0: i32, %arg1: i32) -> (i32, i32, i32) {
    %c0_i32 = arith.constant 0 : i32
    %c0_i32_0 = arith.constant 0 : i32
    %c0_i32_1 = arith.constant 0 : i32
    return %arg1, %c0_i32, %c0_i32_0 : i32, i32, i32
  }
  func.func @transform_4(%arg0: i32, %arg1: i32) -> (i32, i32, i32) {
    %c0_i32 = arith.constant 0 : i32
    %c0_i32_0 = arith.constant 0 : i32
    %c0_i32_1 = arith.constant 0 : i32
    return %arg1, %c0_i32, %c0_i32_0 : i32, i32, i32
  }
  func.func @transform_5(%arg0: i32, %arg1: i32) -> (i32, i32, i32) {
    %c0_i32 = arith.constant 0 : i32
    %c0_i32_0 = arith.constant 0 : i32
    %c0_i32_1 = arith.constant 0 : i32
    return %arg0, %c0_i32, %c0_i32_0 : i32, i32, i32
  }
}

</mosaic_0001>

<bundles_post_ra>
// kernel: tpu_custom_call.1
= control target key start
LH: loop header
LB: loop body
LE: loop exit
PB: predicated region body
PF: predicated region fallthrough
CT: control target
= control target key end

     0   :  { %s1148_s18 = smov 0   ;;  %s1150_s19 = smov 0   ;;  %s1389_s0 = inlined_call_operand.vmem [shape: f32[2,16,8], index: 0, kind: input, shape index: {}]   ;;  %s1390_s1 = inlined_call_operand.vmem [shape: f32[3,2,1,8], index: 1, kind: input, shape index: {}]   ;;  %s1391_s2 = inlined_call_operand.vmem [shape: bf16[3,3,8,16], index: 2, kind: input, shape index: {}]   ;;  %s1392_s3 = inlined_call_operand.vmem [shape: bf16[3,8,16], index: 3, kind: input, shape index: {}]   ;;  %s1393_s4 = inlined_call_operand.vmem [shape: f32[3,1,64], index: 4, kind: input, shape index: {}]   ;;  %s1394_s5 = inlined_call_operand.vmem [shape: f32[2,16,8], index: 5, kind: output, shape index: {}]  }
   0x1   :  { %s1152_s20 = smov 0  }
   0x2 LB: > { %s24_s21 = sadd.s32 1, %s1107_s19  ;;  %p956_p0 = scmp.ge.s32.totalorder %s1111_s20, 1  ;;  %s1111_s20 = sphi %s1152_s20, %s15_s20   ;;  %s1107_s19 = sphi %s1150_s19, %s1398_s19   ;;  %s1103_s18 = sphi %s1148_s18, %s1397_s18  }
   0x3   : > { %p25_p1 = scmp.ge.s32.totalorder %s24_s21, 3  ;;  %p244_p2 = scmp.lt.s32.totalorder %s1111_s20, 4 }
   0x5   : > { %s1400_s21 = smov (%p25_p1, %s24_s21), 0  ;;  %p245_p3 = pnand %p956_p0, %p244_p2 }
   0x6   : > { %p302_p4 = scmp.lt.s32.totalorder (!%p245_p3), %s1103_s18, 2  ;;  %p960_p5 = scmp.ne.s32.totalorder (!%p245_p3), %s1103_s18, 0 }
   0x7   : > { %248 = sbr.rel (%p245_p3) target bundleno = 945 (0x3b1), region = 40 }
   0xe   : > { %s1170_s22 = scalar_select %p302_p4, %s1103_s18, 2 }
   0xf   : > { %333 = sbr.rel (%p960_p5) target bundleno = 22 (0x16), region = 44  ;;  %v334_v0 = vld [vmem:[%s1389_s0] sm:$0xff] (!%p960_p5)  ;;  %vm338_vm0 = vcmask (!%p960_p5), 64512   ;;  %v335_v1 = vld [vmem:[%s1389_s0 + $0x8] sm:$0xff] (!%p960_p5)  ;;  %v336_v2 = vld [vmem:[%s1389_s0 + $0x10] sm:$0xff] (!%p960_p5)  ;;  %v1113_v4 = vmov (!%p960_p5), 0.0  }
  0x10   : > { %s957_s23 = sshll.u32 %s1170_s22, 1  ;;  %s1027_s24 = smul.u32 12, %s1170_s22  ;;  %339 = vst.msk [vmem:[#allocation2] sm:$0xff] (!%p960_p5), %vm338_vm0, %v334_v0  ;;  %340 = vst.msk [vmem:[#allocation2 + $0x8] sm:$0xff] (!%p960_p5), %vm338_vm0, %v335_v1  ;;  %v337_v3 = vld [vmem:[%s1389_s0 + $0x18] sm:$0xff] (!%p960_p5) }
  0x11   : > { %s1177_s27 = scalar_lea.vmem %s1390_s1, %s957_s23  ;;  %s959_s28 = sshll.u32 %s1170_s22, 2  ;;  %341 = vst.msk [vmem:[#allocation2 + $0x10] sm:$0xff] (!%p960_p5), %vm338_vm0, %v336_v2  ;;  %343 = vst.msk [vmem:[%s1394_s5] sm:$0xff] (!%p960_p5), %vm338_vm0, %v1113_v4 }
  0x12   : > { %s1183_s6 = scalar_lea.vmem %s1391_s2, %s1027_s24  ;;  %s1188_s9 = scalar_lea.vmem %s1392_s3, %s959_s28  ;;  %344 = vst.msk [vmem:[%s1394_s5 + $0x8] sm:$0xff] (!%p960_p5), %vm338_vm0, %v1113_v4  ;;  %345 = vst.msk [vmem:[%s1394_s5 + $0x10] sm:$0xff] (!%p960_p5), %vm338_vm0, %v1113_v4 }
  0x13   : > { %s321_s12 = scalar_lea.vmem %s1393_s4, %s1170_s22  ;;  %346 = vst.msk [vmem:[%s1394_s5 + $0x18] sm:$0xff] (!%p960_p5), %vm338_vm0, %v1113_v4  ;;  %342 = vst.msk [vmem:[#allocation2 + $0x18] sm:$0xff] (!%p960_p5), %vm338_vm0, %v337_v3 }
  0x16 PF: > { %v404_v5 = vld [vmem:[%s1183_s6] sm:$0xf]  ;;  %vm412_vm1 = vcmask 1043456   ;;  %v968_v15 = vld [vmem:[%s1183_s6 + $0x8] sm:$0xf]  ;;  %vm388_vm2 = vcmask 1040384  }
  0x17   : > { %v1220_v6 = vld [vmem:[#allocation2] sm:$0xff]  ;;  %v1222_v7 = vld [vmem:[#allocation2 + $0x8] sm:$0xff]  ;;  %1024 = vmatprep.subr.msk.bf16.mxu0 %vm412_vm1, %v404_v5  ;;  %v472_v8 = vsel %vm412_vm1, %v404_v5, 0  ;;  %v961_v11 = vld [vmem:[%s1177_s27] ss:$0 sm:$0xff]  ;;  %vm407_vm4 = vcmask 64512  }
  0x18   : > { %v1226_v9 = vld [vmem:[#allocation2 + $0x10] sm:$0xff]  ;;  %998 = vmatpush3.bf16.msra.mxu0 %v472_v8  ;;  %v962_v12 = vld [vmem:[%s1177_s27 + $0x1] ss:$0 sm:$0xff]  ;;  %v366_v13 = vadd.f32 %v961_v11, %v1220_v6  ;;  %v367_v14 = vadd.f32 %v961_v11, %v1222_v7  ;;  %v963_v18 = vld [vmem:[%s1183_s6 + $0x4] sm:$0xf]  ;;  %vm399_vm5 = vcmask 1047552  }
  0x19   : > { %v368_v16 = vadd.f32 %v962_v12, %v1226_v9  ;;  %1025 = vmatprep.subr.msk.bf16.mxu0 %vm412_vm1, %v968_v15  ;;  %1023 = vmatprep.subr.msk.bf16.mxu1 %vm412_vm1, %v963_v18  ;;  %v414_v20 = vsel %vm412_vm1, %v963_v18, 0  ;;  %vm389_vm3 = vsmask.f32 256  ;;  %vm400_vm6 = vsmask.f32 7424  ;;  %s1114_s22 = smov 96  }
  0x1a   : > { %v1228_v10 = vld [vmem:[#allocation2 + $0x18] sm:$0xff]  ;;  %v370_v19 = vpack.c.bf16 %v367_v14, %v366_v13  ;;  %992 = vmatpush3.bf16.msra.mxu1 %v414_v20  ;;  %vm390_vm7 = vmand %vm388_vm2, %vm389_vm3  ;;  %v532_v34 = vsel %vm412_vm1, %v968_v15, 0  ;;  %vm597_vm9 = vcmask 130048   ;;  %s1116_s13 = smov 120   ;;  %p974_p6 = scmp.ne.s32.totalorder %s1103_s18, 2 }
  0x1b   : > { %v369_v17 = vadd.f32 %v962_v12, %v1228_v10  ;;  %vm1243_vm8 = vmand %vm399_vm5, %vm400_vm6  ;;  %v1261_v44 = vld [vmem:[%s321_s12] ss:$0 sm:$0xff]  ;;  %s1115_s12 = smov 112  }
  0x1c   : > { %v373_v22 = vshrl.u32 %v370_v19, 16  ;;  %v376_v23 = vshll.u32 %v370_v19, 16  ;;  %993 = vmatprep.mubr.msk.bf16.mxu1 %vm407_vm4, %v370_v19 }
  0x1d   : > { %v371_v21 = vpack.c.bf16 %v369_v17, %v368_v16 }
  0x1e   : > { %v375_v26 = vrot.slane %v373_v22, 7  ;;  %v393_v27 = vrot.slane %v376_v23, 1 }
  0x1f   : > { %v380_v24 = vshrl.u32 %v371_v21, 16  ;;  %v383_v25 = vshll.u32 %v371_v21, 16  ;;  %994 = vmatmul.mubr.msk.bf16.vlgmr.msra.gmra.mrb[0].mxu1 %vm407_vm4, %v371_v21 }
  0x20   : > { %v378_v30 = vor.u32 %v376_v23, %v375_v26  ;;  %v394_v31 = vor.u32 %v393_v27, %v373_v22 }
  0x21   : > { %v382_v28 = vrot.slane %v380_v24, 7  ;;  %v395_v37 = vrot.slane %v383_v25, 1 }
  0x22   : > { %v391_v33 = vsel %vm390_vm7, 0, %v378_v30  ;;  %v402_v35 = vsel %vm1243_vm8, %v394_v31, 0 }
  0x23   : > { %v385_v32 = vor.u32 %v383_v25, %v382_v28  ;;  %999 = vmatprep.mubr.msk.bf16.mxu0 %vm407_vm4, %v391_v33  ;;  %v396_v38 = vor.u32 %v395_v37, %v380_v24 }
  0x25   : > { %v392_v36 = vsel %vm390_vm7, 0, %v385_v32  ;;  %v403_v39 = vsel %vm1243_vm8, %v396_v38, 0 }
  0x26   : > { %1000 = vmatmul.mubr.msk.bf16.vlgmr.msra.gmra.mrb[0].mxu0 %vm407_vm4, %v392_v36 }
  0x27   : > { %1004 = vmatpush3.bf16.msra.mxu0 %v532_v34  ;;  %1005 = vmatprep.mubr.msk.bf16.mxu0 %vm407_vm4, %v402_v35 }
  0x32   : > { %1006 = vmatmul.mubr.msk.bf16.vlgmr.msra.gmra.mrb[0].mxu0 %vm407_vm4, %v403_v39 }
  0xf2   : > { %v995_v40 = vpop.f32.mrb[0].mxu1 }
  0xf3   : > { %v450_v41 = vpop.f32.mrb[1].mxu1 }
  0xf4   : > { %v996_v42 = vpop.f32.mrb[2].mxu1 }
  0xf5   : > { %v453_v43 = vpop.f32.mrb[3].mxu1 }
 0x105   : > { %v1007_v45 = vpop.f32.mrb[0].mxu0 }
 0x106   : > { %v1015_v46 = vadd.f32 %v1007_v45, %v995_v40  ;;  %v568_v47 = vpop.f32.mrb[1].mxu0 }
 0x107   : > { %v1016_v48 = vadd.f32 %v568_v47, %v450_v41  ;;  %v1008_v49 = vpop.f32.mrb[2].mxu0 }
 0x108   : > { %v1264_v50 = vadd.f32 %v1015_v46, %v1261_v44  ;;  %v1017_v51 = vadd.f32 %v1008_v49, %v996_v42  ;;  %v571_v52 = vpop.f32.mrb[3].mxu0 }
 0x109   : > { %v1267_v53 = vadd.f32 %v1016_v48, %v1261_v44  ;;  %v1018_v54 = vadd.f32 %v571_v52, %v453_v43 }
 0x10a   : > { %v1270_v55 = vadd.f32 %v1017_v51, %v1261_v44  ;;  %v604_v56 = vsel %vm597_vm9, %v1264_v50, 0.0  ;;  %v617_v2 = vmul.f32 %v1264_v50, %v1264_v50 }
 0x10b   : > { %v1275_v57 = vadd.f32 %v1018_v54, %v1261_v44  ;;  %605 = vadd.xlane.f32.xlu1 %v604_v56  ;;  %v598_v58 = vsel %vm597_vm9, %v1267_v53, 0.0  ;;  %v615_v62 = vmul.f32 %v1267_v53, %v1267_v53 }
 0x10c   : > { %599 = vadd.xlane.f32.xlu0 %v598_v58  ;;  %v607_v59 = vsel %vm597_vm9, %v1270_v55, 0.0  ;;  %v618_v60 = vmul.f32 %v1270_v55, %v1270_v55  ;;  %v625_v4 = vsel %vm597_vm9, %v617_v2, 0.0 }
 0x10d   : > { %v601_v61 = vsel %vm597_vm9, %v1275_v57, 0.0  ;;  %v616_v0 = vmul.f32 %v1275_v57, %v1275_v57  ;;  %v619_v1 = vsel %vm597_vm9, %v615_v62, 0.0 }
 0x10e   : > { %v628_v63 = vsel %vm597_vm9, %v618_v60, 0.0 }
 0x10f   : > { %608 = vadd.xlane.f32.xlu1 %v607_v59  ;;  %v622_v3 = vsel %vm597_vm9, %v616_v0, 0.0 }
 0x110   : > { %602 = vadd.xlane.f32.xlu0 %v601_v61 }
 0x113   : > { %629 = vadd.xlane.f32.xlu1 %v628_v63 }
 0x114   : > { %620 = vadd.xlane.f32.xlu0 %v619_v1 }
 0x117   : > { %623 = vadd.xlane.f32.xlu1 %v622_v3 }
 0x118   : > { %626 = vadd.xlane.f32.xlu0 %v625_v4 }
 0x128   : > { %666 = vrot.lane.b32.xlu1 %v1261_v44, %s1114_s22 }
 0x12e   : > { %659 = vrot.lane.b32.xlu0 %v1261_v44, %s1115_s12 }
 0x198   : > { %v606_v5 = vpop.xlane.xlu1 %605 }
 0x199   : > { %v600_v8 = vpop.xlane.xlu0 %599  ;;  %v613_v20 = vmul.f32 0.0625, %v606_v5 }
 0x19a   : > { %v611_v14 = vmul.f32 0.0625, %v600_v8  ;;  %v719_v8 = vld [vmem:[%s1188_s9] sm:$0xf]  ;;  %s1117_s9 = smov 80  }
 0x19b   : > { %v641_v30 = vmul.f32 %v613_v20, %v613_v20  ;;  %v637_v49 = vsub.f32 %v1264_v50, %v613_v20  ;;  %1026 = vmatprep.subr.msk.bf16.mxu1 %vm412_vm1, %v719_v8 }
 0x19c   : > { %v609_v11 = vpop.xlane.xlu1 %608  ;;  %v639_v21 = vmul.f32 %v611_v14, %v611_v14  ;;  %v635_v39 = vsub.f32 %v1267_v53, %v611_v14 }
 0x19d   : > { %v614_v12 = vmul.f32 0.0625, %v609_v11  ;;  %v603_v13 = vpop.xlane.xlu0 %602 }
 0x19e   : > { %v612_v17 = vmul.f32 0.0625, %v603_v13 }
 0x19f   : > { %v642_v16 = vmul.f32 %v614_v12, %v614_v12  ;;  %v638_v37 = vsub.f32 %v1270_v55, %v614_v12 }
 0x1a0   : > { %v630_v15 = vpop.xlane.xlu1 %629  ;;  %v640_v26 = vmul.f32 %v612_v17, %v612_v17  ;;  %v636_v46 = vsub.f32 %v1275_v57, %v612_v17  ;;  %v730_v17 = vsel %vm412_vm1, %v719_v8, 0 }
 0x1a1   : > { %v634_v18 = vmul.f32 0.0625, %v630_v15  ;;  %v621_v19 = vpop.xlane.xlu0 %620  ;;  %1010 = vmatpush3.bf16.msra.mxu1 %v730_v17 }
 0x1a2   : > { %v631_v22 = vmul.f32 0.0625, %v621_v19 }
 0x1a3   : > { %v646_v23 = vsub.f32 %v634_v18, %v642_v16 }
 0x1a4   : > { %v643_v24 = vsub.f32 %v631_v22, %v639_v21  ;;  %v624_v25 = vpop.xlane.xlu1 %623 }
 0x1a5   : > { %v650_v27 = vadd.f32 1e-05, %v646_v23  ;;  %v632_v28 = vmul.f32 0.0625, %v624_v25  ;;  %v627_v29 = vpop.xlane.xlu0 %626 }
 0x1a6   : > { %v647_v31 = vadd.f32 1e-05, %v643_v24  ;;  %v633_v32 = vmul.f32 0.0625, %v627_v29 }
 0x1a7   : > { %1057 = vrsqrt.f32 %v650_v27  ;;  %v644_v33 = vsub.f32 %v632_v28, %v640_v26 }
 0x1a8   : > { %1059 = vrsqrt.f32 %v647_v31  ;;  %v645_v34 = vsub.f32 %v633_v32, %v641_v30  ;;  %v667_v45 = vpop.permute.xlu1 %666 }
 0x1a9   : > { %v648_v35 = vadd.f32 1e-05, %v644_v33  ;;  %v660_v40 = vpop.permute.xlu0 %659 }
 0x1aa   : > { %v649_v36 = vadd.f32 1e-05, %v645_v34 }
 0x1ab   : > { %1061 = vrsqrt.f32 %v648_v35 }
 0x1ac   : > { %1063 = vrsqrt.f32 %v649_v36 }
 0x1b1   : > { %v1058_v38 = vpop.eup %1057 }
 0x1b2   : > { %v1060_v41 = vpop.eup %1059  ;;  %v658_v42 = vmul.f32 %v1058_v38, %v638_v37 }
 0x1b3   : > { %v655_v43 = vmul.f32 %v1060_v41, %v635_v39 }
 0x1b4   : > { %v665_v47 = vmul.f32 %v660_v40, %v658_v42 }
 0x1b5   : > { %v1062_v48 = vpop.eup %1061  ;;  %v662_v51 = vmul.f32 %v660_v40, %v655_v43 }
 0x1b6   : > { %v1064_v52 = vpop.eup %1063  ;;  %v656_v54 = vmul.f32 %v1062_v48, %v636_v46  ;;  %v672_v56 = vadd.f32 %v667_v45, %v665_v47 }
 0x1b7   : > { %v657_v58 = vmul.f32 %v1064_v52, %v637_v49  ;;  %v669_v55 = vadd.f32 %v667_v45, %v662_v51 }
 0x1b8   : > { %v663_v59 = vmul.f32 %v660_v40, %v656_v54  ;;  %v680_v62 = vsub.f32 0.0, %v672_v56 }
 0x1b9   : > { %v664_v60 = vmul.f32 %v660_v40, %v657_v58  ;;  %v677_v53 = vsub.f32 0.0, %v669_v55  ;;  %v795_v58 = vld [vmem:[%s1394_s5 + $0x10] sm:$0xff] }
 0x1ba   : > { %v670_v61 = vadd.f32 %v667_v45, %v663_v59  ;;  %v687_v3 = vmul.f32 1.442695, %v680_v62 }
 0x1bb   : > { %v671_v63 = vadd.f32 %v667_v45, %v664_v60  ;;  %v681_v0 = vmul.f32 1.442695, %v677_v53  ;;  %v796_v60 = vld [vmem:[%s1394_s5 + $0x18] sm:$0xff] }
 0x1bc   : > { %v678_v1 = vsub.f32 0.0, %v670_v61 }
 0x1bd   : > { %v679_v57 = vsub.f32 0.0, %v671_v63  ;;  %1065 = vpow2.f32 %v681_v0 }
 0x1be   : > { %v683_v2 = vmul.f32 1.442695, %v678_v1 }
 0x1bf   : > { %v685_v50 = vmul.f32 1.442695, %v679_v57 }
 0x1c0   : > { %1067 = vpow2.f32 %v683_v2 }
 0x1c1   : > { %1069 = vpow2.f32 %v685_v50 }
 0x1c2   : > { %1071 = vpow2.f32 %v687_v3 }
 0x1c7   : > { %v1066_v4 = vpop.eup %1065 }
 0x1c8   : > { %v689_v5 = vadd.f32 1.0, %v1066_v4 }
 0x1ca   : > { %v1068_v11 = vpop.eup %1067  ;;  %1073 = vrcp.f32 %v689_v5 }
 0x1cb   : > { %v1070_v12 = vpop.eup %1069  ;;  %v690_v13 = vadd.f32 1.0, %v1068_v11 }
 0x1cc   : > { %v1072_v14 = vpop.eup %1071  ;;  %v691_v15 = vadd.f32 1.0, %v1070_v12 }
 0x1cd   : > { %1075 = vrcp.f32 %v690_v13  ;;  %v692_v16 = vadd.f32 1.0, %v1072_v14 }
 0x1ce   : > { %1077 = vrcp.f32 %v691_v15 }
 0x1cf   : > { %1079 = vrcp.f32 %v692_v16 }
 0x1d0   : > { %1081 = vtanh.f32 %v669_v55 }
 0x1d1   : > { %1083 = vtanh.f32 %v670_v61 }
 0x1d2   : > { %1085 = vtanh.f32 %v672_v56 }
 0x1d3   : > { %1087 = vtanh.f32 %v671_v63 }
 0x1d4   : > { %v1074_v18 = vpop.eup %1073 }
 0x1d5   : > { %701 = vrot.lane.b32.xlu1 %v1074_v18, %s1116_s13 }
 0x1d7   : > { %v1076_v19 = vpop.eup %1075 }
 0x1d8   : > { %v1078_v20 = vpop.eup %1077 }
 0x1d9   : > { %705 = vrot.lane.b32.xlu0 %v1078_v20, %s1116_s13  ;;  %703 = vrot.lane.b32.xlu1 %v1076_v19, %s1116_s13  ;;  %v1080_v21 = vpop.eup %1079 }
 0x1da   : > { %v1082_v23 = vpop.eup %1081 }
 0x1db   : > { %v1084_v24 = vpop.eup %1083 }
 0x1dc   : > { %v1086_v29 = vpop.eup %1085 }
 0x1dd   : > { %720 = vrot.lane.b32.xlu0 %v1261_v44, %s1117_s9  ;;  %707 = vrot.lane.b32.xlu1 %v1080_v21, %s1116_s13  ;;  %v1088_v31 = vpop.eup %1087 }
 0x247   : > { %v702_v22 = vpop.permute.xlu1 %701 }
 0x248   : > { %v713_v26 = vmul.f32 %v1082_v23, %v702_v22 }
 0x24b   : > { %v704_v25 = vpop.permute.xlu1 %703  ;;  %v706_v28 = vpop.permute.xlu0 %705 }
 0x24c   : > { %v714_v27 = vmul.f32 %v1084_v24, %v704_v25  ;;  %v715_v33 = vmul.f32 %v1088_v31, %v706_v28 }
 0x24e   : > { %v717_v30 = vpack.c.bf16 %v714_v27, %v713_v26 }
 0x24f   : > { %v708_v32 = vpop.permute.xlu1 %707  ;;  %v721_v35 = vpop.permute.xlu0 %720 }
 0x250   : > { %v716_v34 = vmul.f32 %v1086_v29, %v708_v32  ;;  %1011 = vmatprep.mubr.msk.bf16.mxu1 %vm407_vm4, %v717_v30 }
 0x252   : > { %v718_v44 = vpack.c.bf16 %v716_v34, %v715_v33 }
 0x254   : > { %1012 = vmatmul.mubr.msk.bf16.vlgmr.msra.gmra.mrb[4].mxu1 %vm407_vm4, %v718_v44 }
 0x327   : > { %v1013_v36 = vpop.f32.mrb[4].mxu1 }
 0x328   : > { %v775_v37 = vadd.f32 %v1013_v36, %v721_v35  ;;  %v766_v38 = vpop.f32.mrb[5].mxu1 }
 0x329   : > { %v767_v39 = vadd.f32 %v766_v38, %v721_v35  ;;  %v1014_v40 = vpop.f32.mrb[6].mxu1 }
 0x32a   : > { %v783_v41 = vadd.f32 %v775_v37, %v1226_v9  ;;  %v778_v42 = vadd.f32 %v1014_v40, %v721_v35  ;;  %v769_v43 = vpop.f32.mrb[7].mxu1 }
 0x32b   : > { %v781_v45 = vadd.f32 %v767_v39, %v1220_v6  ;;  %v770_v46 = vadd.f32 %v769_v43, %v721_v35  ;;  %801 = vrot.lane.b32.xlu1 %v767_v39, %s1116_s13  ;;  %v793_v6 = vld [vmem:[%s1394_s5] sm:$0xff] }
 0x32c   : > { %v787_v47 = vmul.f32 0.70710677, %v783_v41  ;;  %v784_v48 = vadd.f32 %v778_v42, %v1228_v10  ;;  %v794_v10 = vld [vmem:[%s1394_s5 + $0x8] sm:$0xff] }
 0x32d   : > { %v785_v49 = vmul.f32 0.70710677, %v781_v45  ;;  %v782_v51 = vadd.f32 %v770_v46, %v1222_v7  ;;  %803 = vrot.lane.b32.xlu0 %v770_v46, %s1116_s13 }
 0x32e   : > { %791 = vst.msk [vmem:[#allocation2 + $0x10] sm:$0xff] %vm407_vm4, %v787_v47  ;;  %v788_v52 = vmul.f32 0.70710677, %v784_v48 }
 0x32f   : > { %789 = vst.msk [vmem:[#allocation2] sm:$0xff] %vm407_vm4, %v785_v49  ;;  %v786_v9 = vmul.f32 0.70710677, %v782_v51  ;;  %805 = vrot.lane.b32.xlu1 %v775_v37, %s1116_s13 }
 0x330   : > { %792 = vst.msk [vmem:[#allocation2 + $0x18] sm:$0xff] %vm407_vm4, %v788_v52 }
 0x331   : > { %790 = vst.msk [vmem:[#allocation2 + $0x8] sm:$0xff] %vm407_vm4, %v786_v9  ;;  %807 = vrot.lane.b32.xlu0 %v778_v42, %s1116_s13 }
 0x39d   : > { %v802_v7 = vpop.permute.xlu1 %801 }
 0x39e   : > { %v813_v54 = vadd.f32 %v802_v7, %v793_v6 }
 0x39f   : > { %v804_v56 = vpop.permute.xlu0 %803 }
 0x3a0   : > { %817 = vst.msk [vmem:[%s1394_s5] sm:$0xff] %vm407_vm4, %v813_v54  ;;  %v814_v55 = vadd.f32 %v804_v56, %v794_v10  ;;  %824 = sbr.rel (%p974_p6) target bundleno = 945 (0x3b1), region = 48 }
 0x3a1   : > { %v806_v59 = vpop.permute.xlu1 %805 }
 0x3a2   : > { %818 = vst.msk [vmem:[%s1394_s5 + $0x8] sm:$0xff] %vm407_vm4, %v814_v55  ;;  %v815_v53 = vadd.f32 %v806_v59, %v795_v58 }
 0x3a3   : > { %v808_v61 = vpop.permute.xlu0 %807 }
 0x3a4   : > { %819 = vst.msk [vmem:[%s1394_s5 + $0x10] sm:$0xff] %vm407_vm4, %v815_v53  ;;  %v816_v62 = vadd.f32 %v808_v61, %v796_v60 }
 0x3a6   : > { %820 = vst.msk [vmem:[%s1394_s5 + $0x18] sm:$0xff] %vm407_vm4, %v816_v62 }
 0x3a7   : > { %v825_v63 = vld [vmem:[%s1394_s5] sm:$0xff] }
 0x3a8   : > { %v829_v57 = vmul.f32 0.57735026, %v825_v63 }
 0x3a9   : > { %v826_v0 = vld [vmem:[%s1394_s5 + $0x8] sm:$0xff] }
 0x3aa   : > { %v830_v2 = vmul.f32 0.57735026, %v826_v0  ;;  %833 = vst.msk [vmem:[%s1394_s5] sm:$0xff] %vm407_vm4, %v829_v57 }
 0x3ab   : > { %v827_v1 = vld [vmem:[%s1394_s5 + $0x10] sm:$0xff] }
 0x3ac   : > { %v831_v3 = vmul.f32 0.57735026, %v827_v1  ;;  %834 = vst.msk [vmem:[%s1394_s5 + $0x8] sm:$0xff] %vm407_vm4, %v830_v2 }
 0x3ad   : > { %v828_v50 = vld [vmem:[%s1394_s5 + $0x18] sm:$0xff] }
 0x3ae   : > { %835 = vst.msk [vmem:[%s1394_s5 + $0x10] sm:$0xff] %vm407_vm4, %v831_v3  ;;  %v832_v4 = vmul.f32 0.57735026, %v828_v50 }
 0x3b0   : > { %836 = vst.msk [vmem:[%s1394_s5 + $0x18] sm:$0xff] %vm407_vm4, %v832_v4 }
 0x3b1 PF: > { %s15_s20 = sadd.s32 1, %s1111_s20   ;;  %s1397_s18 = smov %s1107_s19 }
 0x3b2   : > { %p12_p7 = scmp.ge.s32.totalorder %s15_s20, 5   ;;  %s1398_s19 = smov %s1400_s21 }
 0x3b4   :  { %14 = sbr.rel (!%p12_p7) target bundleno = 2 (0x2), region = 92 }

</bundles_post_ra>
